<compile_context>
chip_gen: v6e
topology: v6e:2x2x1
jax: 0.10.0
libtpu: 0.0.40
codegen_flags: <defaults>
</compile_context>

<pallas_src>
import functools

import jax
import jax.numpy as jnp
from jax.experimental import pallas as pl
from jax.experimental.pallas import tpu as pltpu


def _round_up(x, m):
    return ((x + m - 1) // m) * m


def _usable_vmem_bytes():
    """Per-core VMEM budget the kernel is allowed to plan against."""
    try:
        cap = int(pltpu.get_tpu_info().vmem_capacity_bytes)
        if cap <= 0:
            raise ValueError
    except Exception:
        cap = 64 << 20  # conservative: v7x has 64 MiB per TensorCore
    # Leave headroom for compiler-internal scratch and neighboring buffers.
    return int(cap * 0.75)


# --------------------------------------------------------------------------
# Kernels
# --------------------------------------------------------------------------
def ffn_kernel_resident(x_ref, w1_ref, b1_ref, w2_ref, b2_ref, o_ref):
    """Whole FFN for one row tile; W1/W2 stay resident in VMEM (constant block)."""
    h = jnp.dot(x_ref[...], w1_ref[...], preferred_element_type=jnp.float32)
    h = jnp.maximum(h + b1_ref[...], 0.0)
    # dropout: inference mode -> identity
    y = jnp.dot(h.astype(w2_ref.dtype), w2_ref[...],
                preferred_element_type=jnp.float32)
    o_ref[...] = (y + b2_ref[...]).astype(o_ref.dtype)


def ffn_kernel_ktiled(x_ref, w1_ref, b1_ref, w2_ref, b2_ref, o_ref, acc_ref):
    """One (row-tile, Dff-slab) step with an f32 accumulator (large-Dff fallback)."""
    k = pl.program_id(1)

    @pl.when(k == 0)
    def _init():
        acc_ref[...] = jnp.zeros_like(acc_ref)

    h = jnp.dot(x_ref[...], w1_ref[...], preferred_element_type=jnp.float32)
    h = jnp.maximum(h + b1_ref[...], 0.0)
    # dropout: inference mode -> identity
    acc_ref[...] += jnp.dot(h.astype(w2_ref.dtype), w2_ref[...],
                            preferred_element_type=jnp.float32)

    @pl.when(k == pl.num_programs(1) - 1)
    def _finalize():
        o_ref[...] = (acc_ref[...] + b2_ref[...]).astype(o_ref.dtype)


# --------------------------------------------------------------------------
# One-time parameter preparation
# --------------------------------------------------------------------------
def prepare_ffn_params(w1, b1, w2, b2, dtype=None):
    """One-time weight prep (transpose + pad + optional cast).

    w1 : (dim_ff, dim)   -- PyTorch nn.Linear(dim, dim_ff).weight
    b1 : (dim_ff,)
    w2 : (dim, dim_ff)   -- PyTorch nn.Linear(dim_ff, dim).weight
    b2 : (dim,)
    dtype : optional weight dtype (pass jnp.bfloat16 for the fast MXU path).
            Biases stay f32; matmuls accumulate in f32 regardless.
    """
    dim_ff, dim = w1.shape
    d_pad = _round_up(dim, 128)
    dff_pad = _round_up(dim_ff, 256)   # 256-aligned slabs: full-width MXU on v6e/v7x
    w_dtype = w1.dtype if dtype is None else dtype

    w1_t = jnp.zeros((d_pad, dff_pad), w_dtype).at[:dim, :dim_ff].set(
        w1.T.astype(w_dtype))
    w2_t = jnp.zeros((dff_pad, d_pad), w_dtype).at[:dim_ff, :dim].set(
        w2.T.astype(w_dtype))
    b1_p = jnp.zeros((1, dff_pad), jnp.float32).at[:, :dim_ff].set(
        b1.astype(jnp.float32))
    b2_p = jnp.zeros((1, d_pad), jnp.float32).at[:, :dim].set(
        b2.astype(jnp.float32))
    return w1_t, b1_p, w2_t, b2_p


# --------------------------------------------------------------------------
# Wrapper
# --------------------------------------------------------------------------
@functools.partial(jax.jit, static_argnames=("row_tile", "dff_tile"))
def positionwise_ff(x, w1_t, b1_p, w2_t, b2_p, *, row_tile=512, dff_tile=None):
    """
    x     : (batch, seq, dim)            (match the weight dtype for best perf)
    w1_t  : (D_pad, Dff_pad)  pre-transposed, zero-padded W1
    b1_p  : (1, Dff_pad)      f32
    w2_t  : (Dff_pad, D_pad)  pre-transposed, zero-padded W2
    b2_p  : (1, D_pad)        f32
    dff_tile : force the k-tiled fallback with this Dff slab width (testing /
               very large Dff); None = automatic path selection.
    """
    B, S, D = x.shape
    D_pad, Dff_pad = w1_t.shape
    N = B * S

    x_isz = jnp.dtype(x.dtype).itemsize
    w_isz = jnp.dtype(w1_t.dtype).itemsize
    o_isz = x_isz
    usable_vmem = _usable_vmem_bytes()

    # ---------------- tile / path selection (all static, trace time) --------
    TN = min(row_tile, _round_up(N, 8))

    def resident_bytes(tn):
        return (2 * tn * D_pad * x_isz          # x tile (double-buffered)
                + 2 * tn * D_pad * o_isz        # out tile (double-buffered)
                + 2 * D_pad * Dff_pad * w_isz   # W1 (worst-case 2 buffers)
                + 2 * Dff_pad * D_pad * w_isz   # W2
                + 2 * (Dff_pad + D_pad) * 4     # biases
                + tn * Dff_pad * 4              # f32 hidden activation
                + tn * Dff_pad * w_isz          # hidden cast for 2nd matmul
                + tn * D_pad * 4)               # f32 2nd-matmul result

    def ktiled_bytes(tn, tdff):
        return (2 * tn * D_pad * x_isz
                + 2 * tn * D_pad * o_isz
                + 2 * D_pad * tdff * w_isz      # W1 slab, double-buffered
                + 2 * tdff * D_pad * w_isz      # W2 slab, double-buffered
                + 2 * (tdff + D_pad) * 4        # bias slabs
                + tn * D_pad * 4                # f32 accumulator scratch
                + tn * tdff * 4                 # f32 hidden slab
                + tn * tdff * w_isz)

    if dff_tile is not None:
        assert Dff_pad % dff_tile == 0, "dff_tile must divide padded Dff"
        use_resident = False
        TDff = int(dff_tile)
    else:
        use_resident = resident_bytes(TN) <= usable_vmem
        if not use_resident:
            # A smaller row tile with resident weights still beats re-streaming
            # the weights once per row tile.
            for cand in (256, 128, 64):
                if cand < TN and resident_bytes(cand) <= usable_vmem:
                    TN, use_resident = cand, True
                    break
        TDff = None
        if not use_resident:
            chosen = None
            for tn in dict.fromkeys((TN, 256, 128, 64)):
                if tn > TN:
                    continue
                for cand in (4096, 2048, 1024, 512, 256):
                    if Dff_pad % cand == 0 and ktiled_bytes(tn, cand) <= usable_vmem:
                        chosen = (tn, cand)
                        break
                if chosen is not None:
                    break
            if chosen is None:  # last resort: smallest legal slabs
                chosen = (64, 256 if Dff_pad % 256 == 0 else 128)
            TN, TDff = chosen

    # ---------------- activation layout -------------------------------------
    need_col_pad = (D % 128) != 0
    if need_col_pad:
        # Zero-pad so garbage columns never reach the matmul (padded W1 rows
        # are zero, so zero x columns are exact).
        N_rows = _round_up(N, TN)
        x2d = jnp.zeros((N_rows, D_pad), x.dtype).at[:N, :D].set(x.reshape(N, D))
        out_rows = N_rows
    else:
        # No pad / slice passes over HBM; partial last row tile is masked.
        N_rows = N
        x2d = x.reshape(N, D)
        out_rows = N
    grid_rows = pl.cdiv(N_rows, TN)

    # ---------------- pallas_call -------------------------------------------
    if use_resident:
        est = resident_bytes(TN)
        vmem_limit = min(usable_vmem, max(32 << 20, int(est * 1.25) + (2 << 20)))
        cost = pl.CostEstimate(
            flops=4 * N_rows * D_pad * Dff_pad,
            transcendentals=0,
            bytes_accessed=(N_rows * D_pad * (x_isz + o_isz)
                            + 2 * D_pad * Dff_pad * w_isz      # weights read once
                            + (Dff_pad + D_pad) * 4),
        )
        out2d = pl.pallas_call(
            ffn_kernel_resident,
            out_shape=jax.ShapeDtypeStruct((out_rows, D_pad), x.dtype),
            grid_spec=pltpu.PrefetchScalarGridSpec(
                num_scalar_prefetch=0,
                grid=(grid_rows,),
                in_specs=[
                    pl.BlockSpec((TN, D_pad), lambda i: (i, 0)),        # x tile
                    pl.BlockSpec((D_pad, Dff_pad), lambda i: (0, 0)),   # W1 (resident)
                    pl.BlockSpec((1, Dff_pad), lambda i: (0, 0)),       # b1
                    pl.BlockSpec((Dff_pad, D_pad), lambda i: (0, 0)),   # W2 (resident)
                    pl.BlockSpec((1, D_pad), lambda i: (0, 0)),         # b2
                ],
                out_specs=pl.BlockSpec((TN, D_pad), lambda i: (i, 0)),
            ),
            compiler_params=pltpu.CompilerParams(
                dimension_semantics=("parallel",),
                vmem_limit_bytes=vmem_limit,
            ),
            cost_estimate=cost,
        )(x2d, w1_t, b1_p, w2_t, b2_p)
    else:
        est = ktiled_bytes(TN, TDff)
        vmem_limit = min(usable_vmem, max(32 << 20, int(est * 1.25) + (2 << 20)))
        grid_k = Dff_pad // TDff
        cost = pl.CostEstimate(
            flops=4 * N_rows * D_pad * Dff_pad,
            transcendentals=0,
            bytes_accessed=(N_rows * D_pad * (x_isz + o_isz)
                            + grid_rows * 2 * D_pad * Dff_pad * w_isz   # slabs re-read per row tile
                            + grid_rows * (Dff_pad + D_pad) * 4),
        )
        out2d = pl.pallas_call(
            ffn_kernel_ktiled,
            out_shape=jax.ShapeDtypeStruct((out_rows, D_pad), x.dtype),
            grid_spec=pltpu.PrefetchScalarGridSpec(
                num_scalar_prefetch=0,
                grid=(grid_rows, grid_k),
                in_specs=[
                    pl.BlockSpec((TN, D_pad), lambda i, k: (i, 0)),     # x tile
                    pl.BlockSpec((D_pad, TDff), lambda i, k: (0, k)),   # W1 slab
                    pl.BlockSpec((1, TDff), lambda i, k: (0, k)),       # b1 slab
                    pl.BlockSpec((TDff, D_pad), lambda i, k: (k, 0)),   # W2 slab
                    pl.BlockSpec((1, D_pad), lambda i, k: (0, 0)),      # b2
                ],
                out_specs=pl.BlockSpec((TN, D_pad), lambda i, k: (i, 0)),
                scratch_shapes=[pltpu.VMEM((TN, D_pad), jnp.float32)],
            ),
            compiler_params=pltpu.CompilerParams(
                dimension_semantics=("parallel", "arbitrary"),
                vmem_limit_bytes=vmem_limit,
            ),
            cost_estimate=cost,
        )(x2d, w1_t, b1_p, w2_t, b2_p)

    if need_col_pad:
        return out2d[:N, :D].reshape(B, S, D)
    return out2d.reshape(B, S, D)


# --------------------------------------------------------------------------
# Reference + tests
# --------------------------------------------------------------------------
def reference_ff(x, w1, b1, w2, b2):
    h = jnp.maximum(jnp.einsum("bsd,fd->bsf", x, w1) + b1, 0.0)
    return jnp.einsum("bsf,df->bsd", h, w2) + b2


def _make_params(key, dim, dim_ff, dtype=jnp.float32):
    k_w1, k_b1, k_w2, k_b2 = jax.random.split(key, 4)
    bound1 = 1.0 / (dim ** 0.5)
    bound2 = 1.0 / (dim_ff ** 0.5)
    w1 = jax.random.uniform(k_w1, (dim_ff, dim), dtype, -bound1, bound1)
    b1 = jax.random.uniform(k_b1, (dim_ff,), dtype, -bound1, bound1)
    w2 = jax.random.uniform(k_w2, (dim, dim_ff), dtype, -bound2, bound2)
    b2 = jax.random.uniform(k_b2, (dim,), dtype, -bound2, bound2)
    return w1, b1, w2, b2


if __name__ == "__main__":
    key = jax.random.PRNGKey(0)

    # Test 1: small module-like shapes (D not a 128-multiple -> padded path,
    # resident weights, single row tile).
    batch, seq, dim, dim_ff = 2, 8, 32, 64
    k_x, k_p, k_x2, k_p2 = jax.random.split(key, 4)
    x = jax.random.normal(k_x, (batch, seq, dim), dtype=jnp.float32)
    w1, b1, w2, b2 = _make_params(k_p, dim, dim_ff)
    params = prepare_ffn_params(w1, b1, w2, b2)   # one-time transpose/pad
    out = positionwise_ff(x, *params)
    jax.block_until_ready(out)
    ref = reference_ff(x, w1, b1, w2, b2)
    assert out.shape == (batch, seq, dim)
    assert jnp.allclose(out, ref, atol=1e-5, rtol=1e-5), float(
        jnp.max(jnp.abs(out - ref)))

    # Test 2: D is a 128-multiple -> no pad/slice passes, partial last row
    # tile masked by Pallas; resident-weights path with >1 row tile.
    batch2, seq2, dim2, dim_ff2 = 2, 150, 256, 512   # N = 300 rows
    x2 = jax.random.normal(k_x2, (batch2, seq2, dim2), dtype=jnp.float32)
    w1b, b1b, w2b, b2b = _make_params(k_p2, dim2, dim_ff2)
    params2 = prepare_ffn_params(w1b, b1b, w2b, b2b)
    out2 = positionwise_ff(x2, *params2, row_tile=128)
    jax.block_until_ready(out2)
    ref2 = reference_ff(x2, w1b, b1b, w2b, b2b)
    assert out2.shape == (batch2, seq2, dim2)
    assert jnp.allclose(out2, ref2, atol=1e-4, rtol=1e-4), float(
        jnp.max(jnp.abs(out2 - ref2)))

    # Test 3: force the k-tiled fallback (Dff reduction + f32 accumulator).
    out3 = positionwise_ff(x2, *params2, row_tile=128, dff_tile=256)
    jax.block_until_ready(out3)
    assert jnp.allclose(out3, ref2, atol=1e-4, rtol=1e-4), float(
        jnp.max(jnp.abs(out3 - ref2)))

    # Test 4: bf16 operand path (fast MXU / halved weight DMA), f32 accumulate.
    params_bf16 = prepare_ffn_params(w1b, b1b, w2b, b2b, dtype=jnp.bfloat16)
    out4 = positionwise_ff(x2.astype(jnp.bfloat16), *params_bf16)
    jax.block_until_ready(out4)
    assert out4.shape == (batch2, seq2, dim2)
    assert float(jnp.max(jnp.abs(out4.astype(jnp.float32) - ref2))) < 0.1

    # TODO(synk): training-mode dropout (stochastic masking with pltpu.prng_*)
    # is not implemented; this matches the module in eval() mode.
    print("KERNEL_OK")
</pallas_src>

<mosaic_0001>
module attributes {stable_mosaic.version = 11 : i64} {
  func.func @ffn_kernel_resident(%arg0: i32, %arg1: memref<16x128xf32, #tpu.memory_space<vmem>>, %arg2: memref<128x256xf32, #tpu.memory_space<vmem>>, %arg3: memref<1x256xf32, #tpu.memory_space<vmem>>, %arg4: memref<256x128xf32, #tpu.memory_space<vmem>>, %arg5: memref<1x128xf32, #tpu.memory_space<vmem>>, %arg6: memref<16x128xf32, #tpu.memory_space<vmem>>) attributes {dimension_semantics = [#tpu.dimension_semantics<parallel>], iteration_bounds = array<i64: 1>, scalar_prefetch = 0 : i64, scratch_operands = 0 : i64, tpu.core_type = #tpu.core_type<tc>, window_params = [{transform_indices = @transform_0, window_bounds = array<i64: 16, 128>}, {pipeline_mode = #tpu.pipeline_mode<synchronous>, transform_indices = @transform_1, window_bounds = array<i64: 128, 256>}, {pipeline_mode = #tpu.pipeline_mode<synchronous>, transform_indices = @transform_2, window_bounds = array<i64: 1, 256>}, {pipeline_mode = #tpu.pipeline_mode<synchronous>, transform_indices = @transform_3, window_bounds = array<i64: 256, 128>}, {pipeline_mode = #tpu.pipeline_mode<synchronous>, transform_indices = @transform_4, window_bounds = array<i64: 1, 128>}, {transform_indices = @transform_5, window_bounds = array<i64: 16, 128>}]} {
    %c0 = arith.constant 0 : index
    %c0_0 = arith.constant 0 : index
    %0 = vector.load %arg1[%c0, %c0_0] : memref<16x128xf32, #tpu.memory_space<vmem>>, vector<16x128xf32>
    %c0_1 = arith.constant 0 : index
    %c0_2 = arith.constant 0 : index
    %1 = vector.load %arg2[%c0_1, %c0_2] : memref<128x256xf32, #tpu.memory_space<vmem>>, vector<128x256xf32>
    %cst = arith.constant dense<0.000000e+00> : vector<16x256xf32>
    %2 = tpu.matmul %0, %1, %cst {dimension_numbers = #tpu.dot_dimension_numbers<[1], [0], [0], [1], [0, 0, 1, 1], [], []>} : vector<16x128xf32>, vector<128x256xf32>, vector<16x256xf32> -> vector<16x256xf32>
    %c0_3 = arith.constant 0 : index
    %c0_4 = arith.constant 0 : index
    %3 = vector.load %arg3[%c0_3, %c0_4] : memref<1x256xf32, #tpu.memory_space<vmem>>, vector<1x256xf32>
    %4 = vector.broadcast %3 : vector<1x256xf32> to vector<16x256xf32>
    %5 = arith.addf %2, %4 : vector<16x256xf32>
    %cst_5 = arith.constant 0.000000e+00 : f32
    %6 = vector.broadcast %cst_5 : f32 to vector<16x256xf32>
    %7 = arith.maximumf %5, %6 : vector<16x256xf32>
    %c0_6 = arith.constant 0 : index
    %c0_7 = arith.constant 0 : index
    %8 = vector.load %arg4[%c0_6, %c0_7] : memref<256x128xf32, #tpu.memory_space<vmem>>, vector<256x128xf32>
    %cst_8 = arith.constant dense<0.000000e+00> : vector<16x128xf32>
    %9 = tpu.matmul %7, %8, %cst_8 {dimension_numbers = #tpu.dot_dimension_numbers<[1], [0], [0], [1], [0, 0, 1, 1], [], []>} : vector<16x256xf32>, vector<256x128xf32>, vector<16x128xf32> -> vector<16x128xf32>
    %c0_9 = arith.constant 0 : index
    %c0_10 = arith.constant 0 : index
    %10 = vector.load %arg5[%c0_9, %c0_10] : memref<1x128xf32, #tpu.memory_space<vmem>>, vector<1x128xf32>
    %11 = vector.broadcast %10 : vector<1x128xf32> to vector<16x128xf32>
    %12 = arith.addf %9, %11 : vector<16x128xf32>
    %c0_11 = arith.constant 0 : index
    %c0_12 = arith.constant 0 : index
    %13 = vector.load %arg6[%c0_11, %c0_12] : memref<16x128xf32, #tpu.memory_space<vmem>>, vector<16x128xf32>
    tpu.vector_store %arg6[%c0_11, %c0_12], %12 {strides = array<i32>} : memref<16x128xf32, #tpu.memory_space<vmem>>, vector<16x128xf32>,
    return
  }
  func.func @transform_0(%arg0: i32) -> (i32, i32) {
    %c0_i32 = arith.constant 0 : i32
    %c0_i32_0 = arith.constant 0 : i32
    return %arg0, %c0_i32 : i32, i32
  }
  func.func @transform_1(%arg0: i32) -> (i32, i32) {
    %c0_i32 = arith.constant 0 : i32
    %c0_i32_0 = arith.constant 0 : i32
    %c0_i32_1 = arith.constant 0 : i32
    return %c0_i32, %c0_i32_0 : i32, i32
  }
  func.func @transform_2(%arg0: i32) -> (i32, i32) {
    %c0_i32 = arith.constant 0 : i32
    %c0_i32_0 = arith.constant 0 : i32
    %c0_i32_1 = arith.constant 0 : i32
    return %c0_i32, %c0_i32_0 : i32, i32
  }
  func.func @transform_3(%arg0: i32) -> (i32, i32) {
    %c0_i32 = arith.constant 0 : i32
    %c0_i32_0 = arith.constant 0 : i32
    %c0_i32_1 = arith.constant 0 : i32
    return %c0_i32, %c0_i32_0 : i32, i32
  }
  func.func @transform_4(%arg0: i32) -> (i32, i32) {
    %c0_i32 = arith.constant 0 : i32
    %c0_i32_0 = arith.constant 0 : i32
    %c0_i32_1 = arith.constant 0 : i32
    return %c0_i32, %c0_i32_0 : i32, i32
  }
  func.func @transform_5(%arg0: i32) -> (i32, i32) {
    %c0_i32 = arith.constant 0 : i32
    %c0_i32_0 = arith.constant 0 : i32
    return %arg0, %c0_i32 : i32, i32
  }
}

</mosaic_0001>

<bundles_post_ra>
// kernel: positionwise_ff.1
= control target key start
LH: loop header
LB: loop body
LE: loop exit
PB: predicated region body
PF: predicated region fallthrough
CT: control target
= control target key end

     0   :  { %10 = vsyncpa [#allocation3], 0  ;;  %s450_s0 = inlined_call_operand.vmem [shape: f32[16,128], index: 0, kind: input, shape index: {}]   ;;  %s451_s1 = inlined_call_operand.hbm [shape: f32[128,256], index: 1, kind: input, shape index: {}]   ;;  %s452_s2 = inlined_call_operand.vmem [shape: f32[1,256], index: 2, kind: input, shape index: {}]   ;;  %s453_s3 = inlined_call_operand.hbm [shape: f32[256,128], index: 3, kind: input, shape index: {}]   ;;  %s454_s4 = inlined_call_operand.vmem [shape: f32[1,128], index: 4, kind: input, shape index: {}]   ;;  %s455_s5 = inlined_call_operand.vmem [shape: f32[16,128], index: 5, kind: output, shape index: {}]  }
   0x1   :  { %11 = vsyncpa [#allocation5], 0  ;;  %s387_s18 = smov [#allocation2]  }
   0x2   :  { %s19_s19 = sshll.u32 %s387_s18, 4  ;;  %s20_s19 = int_to_ptr.vmem [resolvable:$true] %s19_s19 }
   0x3   :  { %s351_s20 = scalar_lea.vmem %s20_s19, 4096  ;;  %p356_p1 = scmp.lt.s32.totalorder %s20_s19, %s20_s19 }
   0x4   :  { %p352_p0 = scmp.ne.s32.totalorder %s20_s19, %s351_s20  ;;  %p357_p2 = scmp.lt.s32.totalorder %s351_s20, %s351_s20 }
   0x6   :  { %p358_p3 = por %p357_p2, %p356_p1 }
   0x8   :  { %p359_p4 = pnand %p358_p3, %p352_p0 }
   0xa   :  { %362 = shalt.err (!%p359_p4)
}
   0xb   :  { %s388_s21 = smov 256   ;;  %s389_s22 = smov 16  }
   0xc   :  { %25 = dma.hbm_to_vmem [thread:$0]  %s451_s1, 4096, %s20_s19, [#allocation3], %s388_s21, %s388_s21, %s389_s22  }
   0xd   :  { %s390_s25 = smov [#allocation4]  }
   0xe   :  { %s33_s26 = sshll.u32 %s390_s25, 4  ;;  %s34_s26 = int_to_ptr.vmem [resolvable:$true] %s33_s26 }
   0xf   :  { %s371_s27 = scalar_lea.vmem %s34_s26, 4096  ;;  %p376_p6 = scmp.lt.s32.totalorder %s34_s26, %s34_s26 }
  0x10   :  { %p372_p5 = scmp.ne.s32.totalorder %s34_s26, %s371_s27  ;;  %p377_p7 = scmp.lt.s32.totalorder %s371_s27, %s371_s27 }
  0x12   :  { %p378_p8 = por %p377_p7, %p376_p6 }
  0x14   :  { %p379_p9 = pnand %p378_p8, %p372_p5 }
  0x16   :  { %382 = shalt.err (!%p379_p9)
}
  0x17   :  { %s391_s28 = smov 128   ;;  %s392_s29 = smov 8  }
  0x18   :  { %39 = dma.hbm_to_vmem [thread:$0]  %s453_s3, 4096, %s34_s26, [#allocation5], %s391_s28, %s391_s28, %s392_s29  }
  0x19   :  { %383 = dma.done.wait [#allocation3], 4096  }
  0x1a   :  { %384 = vsyncadd [#allocation3], 4294963200 }
  0x1b   :  { %385 = dma.done.wait [#allocation5], 4096  }
  0x1c   :  { %386 = vsyncadd [#allocation5], 4294963200  ;;  %v393_v0 = vmov 0.0   ;;  %v81_v1 = vld [vmem:[#allocation2 + $0xf8] sm:$0xff]  ;;  %v80_v2 = vld [vmem:[#allocation2 + $0xf0] sm:$0xff] }
  0x1d   :  { %158 = vmatprep.mubr.f32.mxu0 %v393_v0  ;;  %v79_v3 = vld [vmem:[#allocation2 + $0xe8] sm:$0xff]  ;;  %94 = vmatprep.subr.mxu0 %v81_v1  ;;  %v78_v4 = vld [vmem:[#allocation2 + $0xe0] sm:$0xff]  ;;  %v77_v5 = vld [vmem:[#allocation2 + $0xd8] sm:$0xff] }
  0x1e   :  { %95 = vmatpush1.msra.mxu0 %v80_v2  ;;  %v76_v6 = vld [vmem:[#allocation2 + $0xd0] sm:$0xff]  ;;  %v75_v7 = vld [vmem:[#allocation2 + $0xc8] sm:$0xff]  ;;  %v74_v8 = vld [vmem:[#allocation2 + $0xc0] sm:$0xff] }
  0x1f   :  { %96 = vmatprep.subr.mxu0 %v79_v3  ;;  %v73_v9 = vld [vmem:[#allocation2 + $0xb8] sm:$0xff]  ;;  %v72_v10 = vld [vmem:[#allocation2 + $0xb0] sm:$0xff]  ;;  %v71_v11 = vld [vmem:[#allocation2 + $0xa8] sm:$0xff]  ;;  %v84_v3 = vlaneseq }
  0x20   :  { %97 = vmatpush1.msra.mxu0 %v78_v4  ;;  %v70_v12 = vld [vmem:[#allocation2 + $0xa0] sm:$0xff]  ;;  %v69_v13 = vld [vmem:[#allocation2 + $0x98] sm:$0xff]  ;;  %v68_v14 = vld [vmem:[#allocation2 + $0x90] sm:$0xff] }
  0x21   :  { %98 = vmatprep.subr.mxu0 %v77_v5  ;;  %v206_v15 = vld [vmem:[#allocation4 + $0xf8] sm:$0xff]  ;;  %v67_v17 = vld [vmem:[#allocation2 + $0x88] sm:$0xff]  ;;  %v205_v18 = vld [vmem:[#allocation4 + $0xf0] sm:$0xff]  ;;  %v85_v4 = vshrl.u32 %v84_v3, 7 }
  0x22   :  { %99 = vmatpush1.msra.mxu0 %v76_v6  ;;  %v190_v16 = vld [vmem:[#allocation4 + $0x78] sm:$0xff]  ;;  %298 = vmatprep.subr.mxu1 %v206_v15  ;;  %v189_v19 = vld [vmem:[#allocation4 + $0x70] sm:$0xff]  ;;  %v66_v20 = vld [vmem:[#allocation2 + $0x80] sm:$0xff] }
  0x23   :  { %100 = vmatprep.subr.mxu0 %v75_v7  ;;  %299 = vmatpush3.msra.mxu1 %v190_v16  ;;  %v204_v21 = vld [vmem:[#allocation4 + $0xe8] sm:$0xff]  ;;  %v65_v22 = vld [vmem:[#allocation2 + $0x78] sm:$0xff]  ;;  %v64_v24 = vld [vmem:[#allocation2 + $0x70] sm:$0xff]  ;;  %v86_v5 = vsub.s32 0, %v85_v4  ;;  %v90_v7 = vsub.s32 1, %v85_v4 }
  0x24   :  { %101 = vmatpush1.msra.mxu0 %v74_v8  ;;  %300 = vmatprep.subr.mxu1 %v205_v18  ;;  %v188_v23 = vld [vmem:[#allocation4 + $0x68] sm:$0xff]  ;;  %v203_v25 = vld [vmem:[#allocation4 + $0xe0] sm:$0xff]  ;;  %v202_v29 = vld [vmem:[#allocation4 + $0xd8] sm:$0xff] }
  0x25   :  { %102 = vmatprep.subr.mxu0 %v73_v9  ;;  %301 = vmatpush3.msra.mxu1 %v189_v19  ;;  %v63_v26 = vld [vmem:[#allocation2 + $0x68] sm:$0xff]  ;;  %v187_v27 = vld [vmem:[#allocation4 + $0x60] sm:$0xff]  ;;  %v61_v30 = vld [vmem:[#allocation2 + $0x58] sm:$0xff] }
  0x26   :  { %103 = vmatpush1.msra.mxu0 %v72_v10  ;;  %302 = vmatprep.subr.mxu1 %v204_v21  ;;  %v62_v28 = vld [vmem:[#allocation2 + $0x60] sm:$0xff]  ;;  %v186_v31 = vld [vmem:[#allocation4 + $0x58] sm:$0xff]  ;;  %v60_v32 = vld [vmem:[#allocation2 + $0x50] sm:$0xff] }
  0x27   :  { %104 = vmatprep.subr.mxu0 %v71_v11  ;;  %303 = vmatpush3.msra.mxu1 %v188_v23  ;;  %v201_v33 = vld [vmem:[#allocation4 + $0xd0] sm:$0xff]  ;;  %v59_v34 = vld [vmem:[#allocation2 + $0x48] sm:$0xff]  ;;  %v58_v36 = vld [vmem:[#allocation2 + $0x40] sm:$0xff] }
  0x28   :  { %105 = vmatpush1.msra.mxu0 %v70_v12  ;;  %304 = vmatprep.subr.mxu1 %v203_v25  ;;  %v185_v35 = vld [vmem:[#allocation4 + $0x50] sm:$0xff]  ;;  %v200_v37 = vld [vmem:[#allocation4 + $0xc8] sm:$0xff]  ;;  %v57_v38 = vld [vmem:[#allocation2 + $0x38] sm:$0xff] }
  0x29   :  { %106 = vmatprep.subr.mxu0 %v69_v13  ;;  %305 = vmatpush3.msra.mxu1 %v187_v27  ;;  %v184_v39 = vld [vmem:[#allocation4 + $0x48] sm:$0xff]  ;;  %v56_v40 = vld [vmem:[#allocation2 + $0x30] sm:$0xff]  ;;  %v199_v41 = vld [vmem:[#allocation4 + $0xc0] sm:$0xff] }
  0x2a   :  { %107 = vmatpush1.msra.mxu0 %v68_v14  ;;  %306 = vmatprep.subr.mxu1 %v202_v29  ;;  %v55_v42 = vld [vmem:[#allocation2 + $0x28] sm:$0xff]  ;;  %v183_v43 = vld [vmem:[#allocation4 + $0x40] sm:$0xff]  ;;  %v198_v45 = vld [vmem:[#allocation4 + $0xb8] sm:$0xff] }
  0x2b   :  { %108 = vmatprep.subr.mxu0 %v67_v17  ;;  %307 = vmatpush3.msra.mxu1 %v186_v31  ;;  %v54_v44 = vld [vmem:[#allocation2 + $0x20] sm:$0xff]  ;;  %v53_v46 = vld [vmem:[#allocation2 + $0x18] sm:$0xff]  ;;  %v52_v48 = vld [vmem:[#allocation2 + $0x10] sm:$0xff] }
  0x2c   :  { %109 = vmatpush1.msra.mxu0 %v66_v20  ;;  %308 = vmatprep.subr.mxu1 %v201_v33  ;;  %v182_v47 = vld [vmem:[#allocation4 + $0x38] sm:$0xff]  ;;  %v197_v49 = vld [vmem:[#allocation4 + $0xb0] sm:$0xff]  ;;  %v51_v50 = vld [vmem:[#allocation2 + $0x8] sm:$0xff] }
  0x2d   :  { %110 = vmatprep.subr.mxu0 %v65_v22  ;;  %309 = vmatpush3.msra.mxu1 %v185_v35  ;;  %v181_v51 = vld [vmem:[#allocation4 + $0x30] sm:$0xff]  ;;  %v50_v52 = vld [vmem:[#allocation2] sm:$0xff]  ;;  %v196_v53 = vld [vmem:[#allocation4 + $0xa8] sm:$0xff] }
  0x2e   :  { %111 = vmatpush1.msra.mxu0 %v64_v24  ;;  %310 = vmatprep.subr.mxu1 %v200_v37  ;;  %v48_v54 = vld [vmem:[%s450_s0] sm:$0xff]  ;;  %v180_v55 = vld [vmem:[#allocation4 + $0x28] sm:$0xff]  ;;  %v194_v59 = vld [vmem:[#allocation4 + $0x98] sm:$0xff] }
  0x2f   :  { %112 = vmatprep.subr.mxu0 %v63_v26  ;;  %311 = vmatpush3.msra.mxu1 %v184_v39  ;;  %v195_v56 = vld [vmem:[#allocation4 + $0xa0] sm:$0xff]  ;;  %v49_v58 = vld [vmem:[%s450_s0 + $0x8] sm:$0xff]  ;;  %v178_v60 = vld [vmem:[#allocation4 + $0x18] sm:$0xff] }
  0x30   :  { %113 = vmatpush1.msra.mxu0 %v62_v28  ;;  %312 = vmatprep.subr.mxu1 %v199_v41  ;;  %v179_v57 = vld [vmem:[#allocation4 + $0x20] sm:$0xff]  ;;  %v193_v61 = vld [vmem:[#allocation4 + $0x90] sm:$0xff]  ;;  %v192_v63 = vld [vmem:[#allocation4 + $0x88] sm:$0xff] }
  0x31   :  { %114 = vmatprep.subr.mxu0 %v61_v30  ;;  %313 = vmatpush3.msra.mxu1 %v183_v43  ;;  %v177_v62 = vld [vmem:[#allocation4 + $0x10] sm:$0xff]  ;;  %v176_v1 = vld [vmem:[#allocation4 + $0x8] sm:$0xff]  ;;  %v175_v2 = vld [vmem:[#allocation4] sm:$0xff] }
  0x32   :  { %115 = vmatpush1.msra.mxu0 %v60_v32  ;;  %314 = vmatprep.subr.mxu1 %v198_v45  ;;  %v82_v6 = vld [vmem:[%s452_s2] sm:$0x3] }
  0x33   :  { %116 = vmatprep.subr.mxu0 %v59_v34  ;;  %315 = vmatpush3.msra.mxu1 %v182_v47  ;;  %v87_v8 = vrot.slane %v82_v6, %v86_v5  ;;  %v91_v9 = vrot.slane %v82_v6, %v90_v7  ;;  %v297_v23 = vld [vmem:[%s454_s4] ss:$0 sm:$0xff] }
  0x34   :  { %117 = vmatpush1.msra.mxu0 %v58_v36  ;;  %316 = vmatprep.subr.mxu1 %v197_v49 }
  0x35   :  { %118 = vmatprep.subr.mxu0 %v57_v38  ;;  %317 = vmatpush3.msra.mxu1 %v181_v51 }
  0x36   :  { %119 = vmatpush1.msra.mxu0 %v56_v40  ;;  %318 = vmatprep.subr.mxu1 %v196_v53 }
  0x37   :  { %120 = vmatprep.subr.mxu0 %v55_v42  ;;  %319 = vmatpush3.msra.mxu1 %v180_v55 }
  0x38   :  { %121 = vmatpush1.msra.mxu0 %v54_v44  ;;  %320 = vmatprep.subr.mxu1 %v195_v56 }
  0x39   :  { %122 = vmatprep.subr.mxu0 %v53_v46  ;;  %321 = vmatpush3.msra.mxu1 %v179_v57 }
  0x3a   :  { %123 = vmatpush1.msra.mxu0 %v52_v48  ;;  %322 = vmatprep.subr.mxu1 %v194_v59 }
  0x3b   :  { %124 = vmatprep.subr.mxu0 %v51_v50  ;;  %323 = vmatpush3.msra.mxu1 %v178_v60 }
  0x3c   :  { %125 = vmatpush1.msra.mxu0 %v50_v52  ;;  %324 = vmatprep.subr.mxu1 %v193_v61 }
  0x3d   :  { %159 = vmatmul.mubr.f32.vlgmr.msra.gmra.mxu0 %v48_v54  ;;  %325 = vmatpush3.msra.mxu1 %v177_v62 }
  0x3e   :  { %164 = vmatprep.mubr.f32.mxu0 %v393_v0  ;;  %326 = vmatprep.subr.mxu1 %v192_v63  ;;  %v191_v0 = vld [vmem:[#allocation4 + $0x80] sm:$0xff] }
  0x3f   :  { %327 = vmatpush3.msra.mxu1 %v176_v1 }
  0x40   :  { %328 = vmatprep.subr.mxu1 %v191_v0 }
  0x41   :  { %165 = vmatmul.mubr.f32.gmra.mxu0 %v49_v58  ;;  %329 = vmatpush3.msra.mxu1 %v175_v2 }
  0xfd   :  { %v160_v10 = vpop.f32.mrf.mxu0 }
  0xfe   :  { %v161_v11 = vadd.f32 %v160_v10, %v87_v8 }
  0xff   :  { %v162_v12 = vpop.f32.mrf.mxu0 }
 0x100   :  { %v163_v13 = vadd.f32 %v162_v12, %v91_v9  ;;  %v171_v16 = vmax.f32 %v161_v11, 0.0 }
 0x101   :  { %v166_v14 = vpop.f32.mrf.mxu0 }
 0x102   :  { %v172_v15 = vmax.f32 %v163_v13, 0.0  ;;  %v167_v17 = vadd.f32 %v166_v14, %v87_v8 }
 0x103   :  { %v168_v18 = vpop.f32.mrf.mxu0 }
 0x104   :  { %v169_v19 = vadd.f32 %v168_v18, %v91_v9  ;;  %278 = vmatprep.mubr.f32.mxu1 %v172_v15  ;;  %v173_v21 = vmax.f32 %v167_v17, 0.0 }
 0x105   :  { %279 = vmatmul.mubr.f32.vlgmr.msra.gmra.mxu1 %v171_v16 }
 0x106   :  { %v174_v20 = vmax.f32 %v169_v19, 0.0 }
 0x108   :  { %283 = vmatprep.mubr.f32.mxu1 %v174_v20 }
 0x109   :  { %284 = vmatmul.mubr.f32.gmra.mxu1 %v173_v21 }
 0x1c5   :  { %v330_v22 = vpop.f32.mrf.mxu1 }
 0x1c7   :  { %v331_v24 = vpop.f32.mrf.mxu1 }
 0x1c8   :  { %v332_v25 = vadd.f32 %v331_v24, %v330_v22 }
 0x1c9   :  { %v333_v26 = vpop.f32.mrf.mxu1 }
 0x1ca   :  { %v281_v27 = vadd.f32 %v332_v25, %v297_v23 }
 0x1cb   :  { %v334_v28 = vpop.f32.mrf.mxu1 }
 0x1cc   :  { %289 = vst [vmem:[%s455_s5] sm:$0xff] %v281_v27  ;;  %v335_v29 = vadd.f32 %v334_v28, %v333_v26 }
 0x1ce   :  { %v286_v30 = vadd.f32 %v335_v29, %v297_v23 }
 0x1d0   :  { %290 = vst [vmem:[%s455_s5 + $0x8] sm:$0xff] %v286_v30 }
 0x1d1   :  { %295 = vsyncpa [#allocation3], 1 }
 0x1d2   :  { %296 = vsyncpa [#allocation5], 1 }

</bundles_post_ra>
